<compile_context>
chip_gen: v7x
topology: tpu7x:2x2x1
jax: 0.10.0
libtpu: 0.0.40
codegen_flags: <defaults>
</compile_context>

<pallas_src>
import jax
import jax.numpy as jnp
from jax.experimental import pallas as pl
from jax.experimental.pallas import tpu as pltpu

N_DIM = 16        # module default n_dim
N_LAYER = 3       # module default n_layer (3 fused layers)
NEG_SLOPE = 0.2
PACK = 128 // N_DIM   # 8 batch rows packed per 128-wide dense row


def _leaky_relu(y):
    # torch.nn.LeakyReLU(0.2): y if y >= 0 else 0.2 * y
    return jnp.where(y >= 0.0, y, NEG_SLOPE * y)


def _noise_mlp_kernel(z_ref, w1_ref, b1_ref, w2_ref, b2_ref, w3_ref, b3_ref,
                      o_ref):
    # z_ref: (TR, 128) lane-dense batch tile (8 logical batch rows per row).
    # w*_ref: (128, 128) block-diagonal weights; b*_ref: (1, 128) tiled bias.
    h = z_ref[...].astype(jnp.float32)  # upcast after load (bf16-I/O safe on v5e)
    h = _leaky_relu(jnp.dot(h, w1_ref[...],
                            preferred_element_type=jnp.float32) + b1_ref[...])
    h = _leaky_relu(jnp.dot(h, w2_ref[...],
                            preferred_element_type=jnp.float32) + b2_ref[...])
    h = _leaky_relu(jnp.dot(h, w3_ref[...],
                            preferred_element_type=jnp.float32) + b3_ref[...])
    o_ref[...] = h.astype(o_ref.dtype)


def _round_up(x, m):
    return ((x + m - 1) // m) * m


def noise_mlp_forward(z, params, tr=2048):
    """z: (B, 16) float32 or bfloat16.  Returns (B, 16) in z.dtype."""
    B, D = z.shape
    assert D == N_DIM, f"expected n_dim={N_DIM}, got {D}"
    w1, b1, w2, b2, w3, b3 = params

    # --- lane-dense repack (free, contiguous reshape) -----------------------
    Bp = _round_up(B, PACK)                 # tiny (<8 row) pad only if ragged
    zp = jnp.pad(z, ((0, Bp - B), (0, 0))) if Bp != B else z
    R = Bp // PACK
    z_dense = zp.reshape(R, PACK * D)       # (R, 128)

    # Block-diagonal 128x128 weights, 128-wide biases (tiny; fuses under jit).
    eye = jnp.eye(PACK, dtype=jnp.float32)
    wd = [jnp.kron(eye, w.astype(jnp.float32)) for w in (w1, w2, w3)]
    bd = [jnp.tile(b.reshape(1, D).astype(jnp.float32), (1, PACK))
          for b in (b1, b2, b3)]

    # --- row-tile selection --------------------------------------------------
    # Multiple of 8 (f32 sublane); ~1 MiB blocks by default; keep >=2 grid
    # steps when R allows so the "parallel" axis shards across v7x's 2 TCs.
    tr = max(8, _round_up(min(tr, R), 8))
    if R > 8 and pl.cdiv(R, tr) < 2:
        tr = _round_up(pl.cdiv(R, 2), 8)
    grid = (pl.cdiv(R, tr),)                # ragged last block handled by Pallas

    x_spec = pl.BlockSpec((tr, 128), lambda i: (i, 0))
    w_spec = pl.BlockSpec((128, 128), lambda i: (0, 0))   # VMEM-resident
    b_spec = pl.BlockSpec((1, 128), lambda i: (0, 0))     # VMEM-resident

    itemsize = jnp.dtype(z.dtype).itemsize
    cost = pl.CostEstimate(
        flops=N_LAYER * 2 * R * 128 * 128,
        transcendentals=0,
        bytes_accessed=2 * R * 128 * itemsize
        + N_LAYER * (128 * 128 + 128) * 4,
    )

    out = pl.pallas_call(
        _noise_mlp_kernel,
        out_shape=jax.ShapeDtypeStruct((R, 128), z.dtype),
        grid=grid,
        in_specs=[x_spec, w_spec, b_spec, w_spec, b_spec, w_spec, b_spec],
        out_specs=x_spec,
        compiler_params=pltpu.CompilerParams(
            dimension_semantics=("parallel",)),
        cost_estimate=cost,
    )(z_dense, wd[0], bd[0], wd[1], bd[1], wd[2], bd[2])

    out = out.reshape(Bp, D)                # free reshape back
    return out[:B] if Bp != B else out


def init_params(key, d=N_DIM):
    """PyTorch nn.Linear default init: U(-1/sqrt(fan_in), +1/sqrt(fan_in)).
    Weights stored pre-transposed as (in_dim, out_dim); biases as (out_dim,)."""
    ks = jax.random.split(key, 2 * N_LAYER)
    bound = 1.0 / jnp.sqrt(float(d))

    def lin(kw, kb):
        w = jax.random.uniform(kw, (d, d), jnp.float32, -bound, bound)
        b = jax.random.uniform(kb, (d,), jnp.float32, -bound, bound)
        return w, b

    w1, b1 = lin(ks[0], ks[1])
    w2, b2 = lin(ks[2], ks[3])
    w3, b3 = lin(ks[4], ks[5])
    return (w1, b1, w2, b2, w3, b3)


def _reference(z, params):
    w1, b1, w2, b2, w3, b3 = params
    h = z.astype(jnp.float32)
    for w, b in ((w1, b1), (w2, b2), (w3, b3)):
        y = h @ w + b.reshape(1, -1)
        h = jnp.where(y >= 0.0, y, NEG_SLOPE * y)
    return h.astype(z.dtype)


if __name__ == "__main__":
    key = jax.random.PRNGKey(0)
    k_z, k_p = jax.random.split(key)
    params = init_params(k_p)

    # Case 1: B a multiple of 8 (no pad/slice); tr=8 forces a 2-long grid to
    # exercise the gridded, weight-resident, lane-dense path.
    B = 128
    z = jax.random.normal(k_z, (B, N_DIM), jnp.float32)
    out = jax.block_until_ready(noise_mlp_forward(z, params, tr=8))
    ref = _reference(z, params)
    assert out.shape == (B, N_DIM)
    assert jnp.allclose(out, ref, atol=1e-5, rtol=1e-5), "mismatch (even B)"

    # Case 2: ragged B (not a multiple of 8) with the default large tile;
    # exercises the small repack pad and the ragged last grid block.
    B2 = 100
    z2 = jax.random.normal(k_z, (B2, N_DIM), jnp.float32)
    out2 = jax.block_until_ready(noise_mlp_forward(z2, params))
    ref2 = _reference(z2, params)
    assert out2.shape == (B2, N_DIM)
    assert jnp.allclose(out2, ref2, atol=1e-5, rtol=1e-5), "mismatch (ragged B)"

    print("KERNEL_OK")
</pallas_src>

<mosaic_0001>
module attributes {stable_mosaic.version = 11 : i64} {
  func.func @_noise_mlp_kernel(%arg0: i32, %arg1: memref<8x128xf32, #tpu.memory_space<vmem>>, %arg2: memref<128x128xf32, #tpu.memory_space<vmem>>, %arg3: memref<1x128xf32, #tpu.memory_space<vmem>>, %arg4: memref<128x128xf32, #tpu.memory_space<vmem>>, %arg5: memref<1x128xf32, #tpu.memory_space<vmem>>, %arg6: memref<128x128xf32, #tpu.memory_space<vmem>>, %arg7: memref<1x128xf32, #tpu.memory_space<vmem>>, %arg8: memref<8x128xf32, #tpu.memory_space<vmem>>) attributes {dimension_semantics = [#tpu.dimension_semantics<parallel>], iteration_bounds = array<i64: 2>, scalar_prefetch = 0 : i64, scratch_operands = 0 : i64, tpu.core_type = #tpu.core_type<tc>, window_params = [{transform_indices = @transform_0, window_bounds = array<i64: 8, 128>}, {pipeline_mode = #tpu.pipeline_mode<synchronous>, transform_indices = @transform_1, window_bounds = array<i64: 128, 128>}, {pipeline_mode = #tpu.pipeline_mode<synchronous>, transform_indices = @transform_2, window_bounds = array<i64: 1, 128>}, {pipeline_mode = #tpu.pipeline_mode<synchronous>, transform_indices = @transform_3, window_bounds = array<i64: 128, 128>}, {pipeline_mode = #tpu.pipeline_mode<synchronous>, transform_indices = @transform_4, window_bounds = array<i64: 1, 128>}, {pipeline_mode = #tpu.pipeline_mode<synchronous>, transform_indices = @transform_5, window_bounds = array<i64: 128, 128>}, {pipeline_mode = #tpu.pipeline_mode<synchronous>, transform_indices = @transform_6, window_bounds = array<i64: 1, 128>}, {transform_indices = @transform_7, window_bounds = array<i64: 8, 128>}]} {
    %c0 = arith.constant 0 : index
    %c0_0 = arith.constant 0 : index
    %0 = vector.load %arg1[%c0, %c0_0] : memref<8x128xf32, #tpu.memory_space<vmem>>, vector<8x128xf32>
    %c0_1 = arith.constant 0 : index
    %c0_2 = arith.constant 0 : index
    %1 = vector.load %arg2[%c0_1, %c0_2] : memref<128x128xf32, #tpu.memory_space<vmem>>, vector<128x128xf32>
    %cst = arith.constant dense<0.000000e+00> : vector<8x128xf32>
    %2 = tpu.matmul %0, %1, %cst {dimension_numbers = #tpu.dot_dimension_numbers<[1], [0], [0], [1], [0, 0, 1, 1], [], []>} : vector<8x128xf32>, vector<128x128xf32>, vector<8x128xf32> -> vector<8x128xf32>
    %c0_3 = arith.constant 0 : index
    %c0_4 = arith.constant 0 : index
    %3 = vector.load %arg3[%c0_3, %c0_4] : memref<1x128xf32, #tpu.memory_space<vmem>>, vector<1x128xf32>
    %4 = vector.broadcast %3 : vector<1x128xf32> to vector<8x128xf32>
    %5 = arith.addf %2, %4 : vector<8x128xf32>
    %cst_5 = arith.constant 0.000000e+00 : f32
    %6 = vector.broadcast %cst_5 : f32 to vector<8x128xf32>
    %7 = arith.cmpf oge, %5, %6 : vector<8x128xf32>
    %cst_6 = arith.constant 2.000000e-01 : f32
    %8 = vector.broadcast %cst_6 : f32 to vector<8x128xf32>
    %9 = arith.mulf %8, %5 : vector<8x128xf32>
    %10 = arith.select %7, %5, %9 : vector<8x128xi1>, vector<8x128xf32>
    %c0_7 = arith.constant 0 : index
    %c0_8 = arith.constant 0 : index
    %11 = vector.load %arg4[%c0_7, %c0_8] : memref<128x128xf32, #tpu.memory_space<vmem>>, vector<128x128xf32>
    %cst_9 = arith.constant dense<0.000000e+00> : vector<8x128xf32>
    %12 = tpu.matmul %10, %11, %cst_9 {dimension_numbers = #tpu.dot_dimension_numbers<[1], [0], [0], [1], [0, 0, 1, 1], [], []>} : vector<8x128xf32>, vector<128x128xf32>, vector<8x128xf32> -> vector<8x128xf32>
    %c0_10 = arith.constant 0 : index
    %c0_11 = arith.constant 0 : index
    %13 = vector.load %arg5[%c0_10, %c0_11] : memref<1x128xf32, #tpu.memory_space<vmem>>, vector<1x128xf32>
    %14 = vector.broadcast %13 : vector<1x128xf32> to vector<8x128xf32>
    %15 = arith.addf %12, %14 : vector<8x128xf32>
    %cst_12 = arith.constant 0.000000e+00 : f32
    %16 = vector.broadcast %cst_12 : f32 to vector<8x128xf32>
    %17 = arith.cmpf oge, %15, %16 : vector<8x128xf32>
    %cst_13 = arith.constant 2.000000e-01 : f32
    %18 = vector.broadcast %cst_13 : f32 to vector<8x128xf32>
    %19 = arith.mulf %18, %15 : vector<8x128xf32>
    %20 = arith.select %17, %15, %19 : vector<8x128xi1>, vector<8x128xf32>
    %c0_14 = arith.constant 0 : index
    %c0_15 = arith.constant 0 : index
    %21 = vector.load %arg6[%c0_14, %c0_15] : memref<128x128xf32, #tpu.memory_space<vmem>>, vector<128x128xf32>
    %cst_16 = arith.constant dense<0.000000e+00> : vector<8x128xf32>
    %22 = tpu.matmul %20, %21, %cst_16 {dimension_numbers = #tpu.dot_dimension_numbers<[1], [0], [0], [1], [0, 0, 1, 1], [], []>} : vector<8x128xf32>, vector<128x128xf32>, vector<8x128xf32> -> vector<8x128xf32>
    %c0_17 = arith.constant 0 : index
    %c0_18 = arith.constant 0 : index
    %23 = vector.load %arg7[%c0_17, %c0_18] : memref<1x128xf32, #tpu.memory_space<vmem>>, vector<1x128xf32>
    %24 = vector.broadcast %23 : vector<1x128xf32> to vector<8x128xf32>
    %25 = arith.addf %22, %24 : vector<8x128xf32>
    %cst_19 = arith.constant 0.000000e+00 : f32
    %26 = vector.broadcast %cst_19 : f32 to vector<8x128xf32>
    %27 = arith.cmpf oge, %25, %26 : vector<8x128xf32>
    %cst_20 = arith.constant 2.000000e-01 : f32
    %28 = vector.broadcast %cst_20 : f32 to vector<8x128xf32>
    %29 = arith.mulf %28, %25 : vector<8x128xf32>
    %30 = arith.select %27, %25, %29 : vector<8x128xi1>, vector<8x128xf32>
    %c0_21 = arith.constant 0 : index
    %c0_22 = arith.constant 0 : index
    %31 = vector.load %arg8[%c0_21, %c0_22] : memref<8x128xf32, #tpu.memory_space<vmem>>, vector<8x128xf32>
    tpu.vector_store %arg8[%c0_21, %c0_22], %30 {strides = array<i32>} : memref<8x128xf32, #tpu.memory_space<vmem>>, vector<8x128xf32>,
    return
  }
  func.func @transform_0(%arg0: i32) -> (i32, i32) {
    %c0_i32 = arith.constant 0 : i32
    %c0_i32_0 = arith.constant 0 : i32
    return %arg0, %c0_i32 : i32, i32
  }
  func.func @transform_1(%arg0: i32) -> (i32, i32) {
    %c0_i32 = arith.constant 0 : i32
    %c0_i32_0 = arith.constant 0 : i32
    %c0_i32_1 = arith.constant 0 : i32
    return %c0_i32, %c0_i32_0 : i32, i32
  }
  func.func @transform_2(%arg0: i32) -> (i32, i32) {
    %c0_i32 = arith.constant 0 : i32
    %c0_i32_0 = arith.constant 0 : i32
    %c0_i32_1 = arith.constant 0 : i32
    return %c0_i32, %c0_i32_0 : i32, i32
  }
  func.func @transform_3(%arg0: i32) -> (i32, i32) {
    %c0_i32 = arith.constant 0 : i32
    %c0_i32_0 = arith.constant 0 : i32
    %c0_i32_1 = arith.constant 0 : i32
    return %c0_i32, %c0_i32_0 : i32, i32
  }
  func.func @transform_4(%arg0: i32) -> (i32, i32) {
    %c0_i32 = arith.constant 0 : i32
    %c0_i32_0 = arith.constant 0 : i32
    %c0_i32_1 = arith.constant 0 : i32
    return %c0_i32, %c0_i32_0 : i32, i32
  }
  func.func @transform_5(%arg0: i32) -> (i32, i32) {
    %c0_i32 = arith.constant 0 : i32
    %c0_i32_0 = arith.constant 0 : i32
    %c0_i32_1 = arith.constant 0 : i32
    return %c0_i32, %c0_i32_0 : i32, i32
  }
  func.func @transform_6(%arg0: i32) -> (i32, i32) {
    %c0_i32 = arith.constant 0 : i32
    %c0_i32_0 = arith.constant 0 : i32
    %c0_i32_1 = arith.constant 0 : i32
    return %c0_i32, %c0_i32_0 : i32, i32
  }
  func.func @transform_7(%arg0: i32) -> (i32, i32) {
    %c0_i32 = arith.constant 0 : i32
    %c0_i32_0 = arith.constant 0 : i32
    return %arg0, %c0_i32 : i32, i32
  }
}

</mosaic_0001>

<bundles_post_ra>
// kernel: tpu_custom_call.1
= control target key start
LH: loop header
LB: loop body
LE: loop exit
PB: predicated region body
PF: predicated region fallthrough
CT: control target
= control target key end

     0   :  { %12 = vsyncpa [#allocation3], 0  ;;  %s1621_s0 = inlined_call_operand.hbm [shape: f32[16,128], index: 0, kind: input, shape index: {}]   ;;  %s1622_s1 = inlined_call_operand.hbm [shape: f32[128,128], index: 1, kind: input, shape index: {}]   ;;  %s1623_s2 = inlined_call_operand.vmem [shape: f32[1,128], index: 2, kind: input, shape index: {}]   ;;  %s1624_s3 = inlined_call_operand.hbm [shape: f32[128,128], index: 3, kind: input, shape index: {}]   ;;  %s1625_s4 = inlined_call_operand.vmem [shape: f32[1,128], index: 4, kind: input, shape index: {}]   ;;  %s1626_s5 = inlined_call_operand.hbm [shape: f32[128,128], index: 5, kind: input, shape index: {}]   ;;  %s1627_s6 = inlined_call_operand.vmem [shape: f32[1,128], index: 6, kind: input, shape index: {}]   ;;  %s1628_s7 = inlined_call_operand.hbm [shape: f32[16,128], index: 7, kind: output, shape index: {}]  }
   0x1   :  { %14 = vsyncpa [#allocation3 + $0x1], 0 }
   0x2   :  { %15 = vsyncpa [#allocation6], 0 }
   0x3   :  { %16 = vsyncpa [#allocation9], 0 }
   0x4   :  { %17 = vsyncpa [#allocation4], 0 }
   0x5   :  { %19 = vsyncpa [#allocation4 + $0x1], 0  ;;  %s1312_s24 = smov 0   ;;  %s1314_s25 = smov 0  }
   0x6   :  { %s1316_s26 = smov 0   ;;  %s1318_s27 = smov 0  }
   0x7 LB: > { %s1333_s28 = sadd.s32 4294967295, %s1260_s27   ;;  %s741_s29 = sadd.s32 4294967294, %s1260_s27   ;;  %s1260_s27 = sphi %s1318_s27, %s1654_s27   ;;  %s1256_s26 = sphi %s1316_s26, %s1653_s26   ;;  %s1252_s25 = sphi %s1314_s25, %s1652_s25   ;;  %s1248_s24 = sphi %s1312_s24, %s1651_s24  }
   0x8   : > { %p45_p0 = scmp.ne.s32.totalorder %s1252_s25, %s1248_s24  ;;  %p1629_p1 = scmp.eq.s32.totalorder %s1333_s28, 0 }
   0x9   : > { %p201_p3 = scmp.eq.s32.totalorder %s741_s29, 1  ;;  %p742_p5 = scmp.ge.s32.totalorder %s1260_s27, 1 }
   0xa   : > { %p1342_p4 = por %p1629_p1, %p45_p0  ;;  %p208_p7 = scmp.lt.s32.totalorder %s1260_s27, 3 }
   0xb   : > { %p1347_p6 = por %p201_p3, %p45_p0  ;;  %s1262_s10 = smov [#allocation5]  }
   0xc   : > { %s1633_s30 = scalar_select %p1342_p4, 1, 0 }
   0xd   : > { %s1634_s8 = scalar_select %p1347_p6, 1, 0 }
   0xe   : > { %p1352_p8 = pnand %p742_p5, %p208_p7  ;;  %s220_s11 = sshll.u32 %s1262_s10, 4  ;;  %s1356_s11 = int_to_ptr.vmem [resolvable:$true] %s220_s11 }
   0xf   : > { %1635 = sst [smem:[#allocation15_spill]] %s1634_s8  ;;  %s1263_s13 = smov [#allocation7]  }
  0x10   : > { %s1636_s9 = scalar_select %p1352_p8, 1, 0 }
  0x11   : > { %p1006_p9 = pneg %p1352_p8  ;;  %s236_s14 = sshll.u32 %s1263_s13, 4  ;;  %s1367_s14 = int_to_ptr.vmem [resolvable:$true] %s236_s14 }
  0x12   : > { %s1264_s15 = smov [#allocation8]   ;;  %s1072_s19 = scalar_lea.hbm %s1622_s1, 2048 }
  0x13   : > { %p1363_p11 = pnand %p1006_p9, %p1629_p1  ;;  %s1369_s16 = sshll.u32 %s1264_s15, 4  ;;  %s253_s16 = int_to_ptr.vmem [resolvable:$true] %s1369_s16 }
  0x14   : > { %p1073_p12 = scmp.ne.s32.totalorder %s1622_s1, %s1072_s19  ;;  %p1079_p5 = scmp.lt.u32.totalorder %s1072_s19, %s1622_s1 }
  0x15   : > { %p1379_p13 = pneg %p1363_p11 }
  0x17   : > { %p1075_p0 = pnand %p1379_p13, %p1073_p12 }
  0x19   : > { %p1076_p3 = pneg %p1075_p0 }
  0x1b   : > { %p1081_p7 = pnand %p1079_p5, %p1076_p3 }
  0x1d   : > { %1084 = shalt.err (!%p1081_p7)
}
  0x1e   : > { %s1085_s10 = scalar_lea.vmem %s1356_s11, 2048  ;;  %p1093_p2 = scmp.lt.s32.totalorder %s1356_s11, %s1356_s11 }
  0x1f   : > { %p1086_p9 = scmp.ne.s32.totalorder %s1356_s11, %s1085_s10  ;;  %p1094_p6 = scmp.lt.s32.totalorder %s1085_s10, %s1085_s10 }
  0x21   : > { %p1088_p10 = pnand %p1086_p9, %p1379_p13  ;;  %p1095_p12 = por %p1094_p6, %p1093_p2 }
  0x23   : > { %p1089_p1 = pneg %p1088_p10 }
  0x25   : > { %p1096_p0 = pnand %p1095_p12, %p1089_p1 }
  0x27   : > { %1099 = shalt.err (!%p1096_p0)
}
  0x28   : > { %s1265_s13 = smov 128   ;;  %s1266_s15 = smov 8  }
  0x29   : > { %1009 = dma.hbm_to_vmem [thread:$0]  (!%p1363_p11), %s1622_s1, 2048, %s1356_s11, [#allocation6], %s1265_s13, %s1265_s13, %s1266_s15  }
  0x2a   : > { %s1100_s21 = scalar_lea.hbm %s1624_s3, 2048 }
  0x2b   : > { %p1101_p1 = scmp.ne.s32.totalorder %s1624_s3, %s1100_s21  ;;  %p1107_p10 = scmp.lt.u32.totalorder %s1100_s21, %s1624_s3 }
  0x2d   : > { %p1103_p2 = pnand %p1101_p1, %p1379_p13 }
  0x2f   : > { %p1104_p6 = pneg %p1103_p2 }
  0x31   : > { %p1109_p3 = pnand %p1107_p10, %p1104_p6 }
  0x33   : > { %1112 = shalt.err (!%p1109_p3)
}
  0x34   : > { %s1113_s11 = scalar_lea.vmem %s1367_s14, 2048  ;;  %p1121_p12 = scmp.lt.s32.totalorder %s1367_s14, %s1367_s14 }
  0x35   : > { %p1114_p5 = scmp.ne.s32.totalorder %s1367_s14, %s1113_s11  ;;  %p1122_p0 = scmp.lt.s32.totalorder %s1113_s11, %s1113_s11 }
  0x37   : > { %p1116_p7 = pnand %p1114_p5, %p1379_p13  ;;  %p1123_p1 = por %p1122_p0, %p1121_p12 }
  0x39   : > { %p1117_p9 = pneg %p1116_p7 }
  0x3b   : > { %p1124_p2 = pnand %p1123_p1, %p1117_p9 }
  0x3d   : > { %1127 = shalt.err (!%p1124_p2)
}
  0x3e   : > { %1012 = dma.hbm_to_vmem [thread:$0]  (!%p1363_p11), %s1624_s3, 2048, %s1367_s14, [#allocation6], %s1265_s13, %s1265_s13, %s1266_s15  }
  0x3f   : > { %s1128_s20 = scalar_lea.hbm %s1626_s5, 2048 }
  0x40   : > { %p1129_p6 = scmp.ne.s32.totalorder %s1626_s5, %s1128_s20  ;;  %p1135_p5 = scmp.lt.u32.totalorder %s1128_s20, %s1626_s5 }
  0x42   : > { %p1131_p10 = pnand %p1129_p6, %p1379_p13 }
  0x44   : > { %p1132_p3 = pneg %p1131_p10 }
  0x46   : > { %p1137_p7 = pnand %p1135_p5, %p1132_p3 }
  0x48   : > { %1140 = shalt.err (!%p1137_p7)
}
  0x49   : > { %s1141_s11 = scalar_lea.vmem %s253_s16, 2048  ;;  %p1149_p1 = scmp.lt.s32.totalorder %s253_s16, %s253_s16 }
  0x4a   : > { %p1142_p9 = scmp.ne.s32.totalorder %s253_s16, %s1141_s11  ;;  %p1150_p2 = scmp.lt.s32.totalorder %s1141_s11, %s1141_s11 }
  0x4c   : > { %p1144_p12 = pnand %p1142_p9, %p1379_p13  ;;  %p1151_p4 = por %p1150_p2, %p1149_p1 }
  0x4e   : > { %p1145_p0 = pneg %p1144_p12 }
  0x50   : > { %p1152_p8 = pnand %p1151_p4, %p1145_p0 }
  0x52   : > { %1155 = shalt.err (!%p1152_p8)
}
  0x53   : > { %1015 = dma.hbm_to_vmem [thread:$0]  (!%p1363_p11), %s1626_s5, 2048, %s253_s16, [#allocation9], %s1265_s13, %s1265_s13, %s1266_s15  }
  0x54   : > { %s1452_s22 = sadd.s32 1, %s1260_s27   ;;  %s32_s17 = sadd.s32 1, %s1256_s26 }
  0x55   : > { %s29_s12 = ssub.s32 %s1260_s27, %s1452_s22  ;;  %p39_p8 = scmp.ne.s32.totalorder %s1256_s26, %s1252_s25 }
  0x56   : > { %p30_p4 = scmp.eq.s32.totalorder %s29_s12, 0  ;;  %p40_p13 = scmp.eq.s32.totalorder %s1260_s27, 0 }
  0x57   : > { %p1027_p6 = scmp.lt.s32.totalorder %s1260_s27, 2  ;;  %p1639_p3 = scmp.eq.s32.totalorder %s1333_s28, 1 }
  0x58   : > { %s1462_s18 = scalar_select %p30_p4, %s1256_s26, %s32_s17  }
  0x59   : > { %p41_p10 = por %p40_p13, %p39_p8  ;;  %p1466_p5 = por %p1639_p3, %p39_p8 }
  0x5a   : > { %s269_s20 = sand.u32 1, %s1256_s26   ;;  %s748_s21 = sshll.u32 %s1260_s27, 7 }
  0x5b   : > { %s747_s16 = sshll.u32 %s269_s20, 3  ;;  %s1475_s23 = scalar_lea.hbm %s1621_s0, %s748_s21 }
  0x5c   : > { %s273_s29 = scalar_lea.vmem [#allocation2], %s747_s16  ;;  %p1477_p11 = pnand %p1027_p6, %p41_p10 }
  0x5d   : > { %s280_s10 = sshll.u32 %s273_s29, 4  ;;  %s270_s14 = scalar_lea.sflag [#allocation3], %s269_s20  ;;  %s1481_s10 = int_to_ptr.vmem [resolvable:$true] %s280_s10 }
  0x5e   : > { %s1156_s8 = scalar_lea.hbm %s1475_s23, 128  ;;  %p1158_p9 = pneg %p1477_p11 }
  0x5f   : > { %p1157_p7 = scmp.ne.s32.totalorder %s1475_s23, %s1156_s8  ;;  %s1161_s21 = scalar_lea.hbm %s1621_s0, 256 }
  0x60   : > { %p1162_p1 = scmp.lt.u32.totalorder %s1475_s23, %s1621_s0  ;;  %p1163_p2 = scmp.lt.u32.totalorder %s1161_s21, %s1156_s8 }
  0x61   : > { %p1159_p12 = pnand %p1158_p9, %p1157_p7  ;;  %p1165_p8 = scmp.lt.u32.totalorder %s1156_s8, %s1475_s23 }
  0x62   : > { %p1164_p4 = por %p1163_p2, %p1162_p1 }
  0x63   : > { %p1160_p0 = pneg %p1159_p12 }
  0x64   : > { %p1166_p13 = por %p1165_p8, %p1164_p4 }
  0x66   : > { %p1167_p6 = pnand %p1166_p13, %p1160_p0 }
  0x68   : > { %1170 = shalt.err (!%p1167_p6)
}
  0x69   : > { %s1171_s20 = scalar_lea.vmem %s1481_s10, 128  ;;  %s1267_s15 = smov [#allocation2]  }
  0x6a   : > { %p1172_p10 = scmp.ne.s32.totalorder %s1481_s10, %s1171_s20  ;;  %s1176_s29 = sshll.u32 %s1267_s15, 4  ;;  %s1177_s29 = int_to_ptr.vmem [resolvable:$false] %s1176_s29 }
  0x6b   : > { %s1178_s12 = scalar_lea.vmem %s1177_s29, 256  ;;  %p1179_p12 = scmp.lt.s32.totalorder %s1481_s10, %s1177_s29 }
  0x6c   : > { %p1174_p3 = pnand %p1172_p10, %p1158_p9  ;;  %p1180_p1 = scmp.lt.s32.totalorder %s1178_s12, %s1171_s20 }
  0x6e   : > { %p1175_p7 = pneg %p1174_p3  ;;  %p1181_p2 = por %p1180_p1, %p1179_p12 }
  0x70   : > { %p1182_p4 = pnand %p1181_p2, %p1175_p7 }
  0x72   : > { %1185 = shalt.err (!%p1182_p4)
}
  0x73   : > { %1019 = dma.hbm_to_vmem [thread:$0]  (!%p1477_p11), %s1475_s23, 128, %s1481_s10, %s270_s14  }
  0x74   : > { %p1642_p0 = scmp.ne.s32.totalorder %s1636_s9, 0 }
  0x75   : > { %s1511_s8 = sand.u32 (!%p1642_p0), 1, %s1252_s25   ;;  %p1643_p9 = scmp.ne.s32.totalorder (!%p1642_p0), %s1633_s30, 0 }
  0x76   : > { %289 = sbr.rel (%p1642_p0) target bundleno = 833 (0x341), region = 48  ;;  %s750_s17 = sshll.u32 (!%p1642_p0), %s1511_s8, 3 }
  0x77   : > { %s292_s21 = scalar_lea.sflag (!%p1642_p0), [#allocation3], %s1511_s8  ;;  %s1517_s16 = scalar_lea.vmem (!%p1642_p0), [#allocation2], %s750_s17 }
  0x7d   : > { %1231 = dma.done.wait (%p1643_p9), %s292_s21, 128  }
  0x7e   : > { %1233 = vsyncadd (%p1643_p9), %s292_s21, 4294967168  ;;  %p1644_p11 = scmp.eq.s32.totalorder %s1333_s28, 0 }
  0x80   : > { %1235 = dma.done.wait (%p1644_p11), [#allocation6], 4096   ;;  %p1645_p8 = pmov %p1644_p11 }
  0x82   : > { %1237 = vsyncadd (%p1645_p8), [#allocation6], 4294963200  ;;  %p1646_p13 = pmov %p1645_p8 }
  0x83   : > { %p1647_p6 = pmov %p1645_p8 }
  0x84   : > { %1239 = dma.done.wait (%p1646_p13), [#allocation9], 2048  }
  0x85   : > { %1241 = vsyncadd (%p1647_p6), [#allocation9], 4294965248  ;;  %v1268_v0 = vmov 0.0|0.0   ;;  %vm1269_vm0 = vmmov 0   ;;  %v1270_v1 = vmov 0.0   ;;  %v339_v2 = vld [vmem:[#allocation5] sm:$0xff] }
  0x86   : > { %918 = vmatprep.subr.bf16.mxu0 %v1268_v0  ;;  %845 = vmatprep.mubr.msk.f32.mxu0 %vm1269_vm0, %v1270_v1  ;;  %v340_v3 = vld [vmem:[#allocation5 + $0x8] sm:$0xff]  ;;  %v341_v4 = vld [vmem:[#allocation5 + $0x10] sm:$0xff]  ;;  %v342_v6 = vld [vmem:[#allocation5 + $0x18] sm:$0xff]  ;;  %s759_s13 = sshll.u32 %s1333_s28, 7  ;;  %s337_s20 = scalar_lea.vmem [#allocation10], %s750_s17 }
  0x87   : > { %942 = vmatprep.subr.bf16.mxu1 %v1268_v0  ;;  %880 = vmatprep.mubr.msk.f32.mxu1 %vm1269_vm0, %v1270_v1  ;;  %v919_v5 = vpack.c.bf16 %v340_v3, %v339_v2  ;;  %v922_v7 = vpack.c.bf16 %v342_v6, %v341_v4  ;;  %v343_v8 = vld [vmem:[#allocation5 + $0x20] sm:$0xff]  ;;  %v344_v9 = vld [vmem:[#allocation5 + $0x28] sm:$0xff]  ;;  %v437_v12 = vld [vmem:[#allocation7 + $0x10] sm:$0xff]  ;;  %s642_s15 = sshll.u32 %s337_s20, 4  ;;  %s1577_s21 = scalar_lea.hbm %s1628_s7, %s759_s13  ;;  %s1579_s15 = int_to_ptr.vmem [resolvable:$true] %s642_s15 }
  0x88   : > { %v435_v10 = vld [vmem:[#allocation7] sm:$0xff]  ;;  %v436_v11 = vld [vmem:[#allocation7 + $0x8] sm:$0xff]  ;;  %v438_v13 = vld [vmem:[#allocation7 + $0x18] sm:$0xff]  ;;  %v925_v14 = vpack.c.bf16 %v344_v9, %v343_v8  ;;  %s1186_s30 = scalar_lea.vmem %s1579_s15, 128  ;;  %s1271_s28 = smov [#allocation10]  }
  0x89   : > { %920 = vmatpush3.bf16.msra.mxu0 %v919_v5  ;;  %v943_v15 = vpack.c.bf16 %v436_v11, %v435_v10  ;;  %v345_v16 = vld [vmem:[#allocation5 + $0x30] sm:$0xff]  ;;  %v346_v17 = vld [vmem:[#allocation5 + $0x38] sm:$0xff]  ;;  %v946_v18 = vpack.c.bf16 %v438_v13, %v437_v12  ;;  %v439_v19 = vld [vmem:[#allocation7 + $0x20] sm:$0xff]  ;;  %p1187_p10 = scmp.ne.s32.totalorder %s1579_s15, %s1186_s30  ;;  %s1190_s17 = sshll.u32 %s1271_s28, 4  ;;  %s1191_s17 = int_to_ptr.vmem [resolvable:$false] %s1190_s17 }
  0x8a   : > { %921 = vmatprep.subr.bf16.mxu0 %v1268_v0  ;;  %v440_v20 = vld [vmem:[#allocation7 + $0x28] sm:$0xff]  ;;  %v928_v21 = vpack.c.bf16 %v346_v17, %v345_v16  ;;  %v347_v22 = vld [vmem:[#allocation5 + $0x40] sm:$0xff]  ;;  %v441_v25 = vld [vmem:[#allocation7 + $0x30] sm:$0xff]  ;;  %s1192_s9 = scalar_lea.vmem %s1191_s17, 256  ;;  %p1193_p12 = scmp.lt.s32.totalorder %s1579_s15, %s1191_s17 }
  0x8b   : > { %944 = vmatpush3.bf16.msra.mxu1 %v943_v15  ;;  %v348_v23 = vld [vmem:[#allocation5 + $0x48] sm:$0xff]  ;;  %v949_v24 = vpack.c.bf16 %v440_v20, %v439_v19  ;;  %v442_v26 = vld [vmem:[#allocation7 + $0x38] sm:$0xff]  ;;  %v349_v28 = vld [vmem:[#allocation5 + $0x50] sm:$0xff]  ;;  %p1188_p3 = pnand %p1187_p10, %p1466_p5  ;;  %p1194_p1 = scmp.lt.s32.totalorder %s1192_s9, %s1186_s30 }
  0x8c   : > { %945 = vmatprep.subr.bf16.mxu1 %v1268_v0  ;;  %v931_v27 = vpack.c.bf16 %v348_v23, %v347_v22  ;;  %v350_v29 = vld [vmem:[#allocation5 + $0x58] sm:$0xff]  ;;  %v952_v30 = vpack.c.bf16 %v442_v26, %v441_v25  ;;  %v443_v31 = vld [vmem:[#allocation7 + $0x40] sm:$0xff]  ;;  %v444_v32 = vld [vmem:[#allocation7 + $0x48] sm:$0xff] }
  0x8d   : > { %923 = vmatpush3.bf16.msra.mxu0 %v922_v7  ;;  %v934_v33 = vpack.c.bf16 %v350_v29, %v349_v28  ;;  %v351_v34 = vld [vmem:[#allocation5 + $0x60] sm:$0xff]  ;;  %v352_v35 = vld [vmem:[#allocation5 + $0x68] sm:$0xff]  ;;  %v955_v36 = vpack.c.bf16 %v444_v32, %v443_v31  ;;  %v445_v37 = vld [vmem:[#allocation7 + $0x50] sm:$0xff]  ;;  %p1189_p7 = pneg %p1188_p3  ;;  %p1195_p2 = por %p1194_p1, %p1193_p12 }
  0x8e   : > { %924 = vmatprep.subr.bf16.mxu0 %v1268_v0  ;;  %v446_v38 = vld [vmem:[#allocation7 + $0x58] sm:$0xff]  ;;  %v937_v39 = vpack.c.bf16 %v352_v35, %v351_v34  ;;  %v353_v40 = vld [vmem:[#allocation5 + $0x70] sm:$0xff]  ;;  %v447_v43 = vld [vmem:[#allocation7 + $0x60] sm:$0xff] }
  0x8f   : > { %947 = vmatpush3.bf16.msra.mxu1 %v946_v18  ;;  %v354_v41 = vld [vmem:[#allocation5 + $0x78] sm:$0xff]  ;;  %v958_v42 = vpack.c.bf16 %v446_v38, %v445_v37  ;;  %v448_v44 = vld [vmem:[#allocation7 + $0x68] sm:$0xff]  ;;  %v449_v48 = vld [vmem:[#allocation7 + $0x70] sm:$0xff]  ;;  %p1196_p4 = pnand %p1195_p2, %p1189_p7 }
  0x90   : > { %948 = vmatprep.subr.bf16.mxu1 %v1268_v0  ;;  %v940_v45 = vpack.c.bf16 %v354_v41, %v353_v40  ;;  %v961_v46 = vpack.c.bf16 %v448_v44, %v447_v43  ;;  %v338_v47 = vld [vmem:[%s1517_s16] sm:$0xff]  ;;  %v531_v51 = vld [vmem:[#allocation8] sm:$0xff]  ;;  %v532_v52 = vld [vmem:[#allocation8 + $0x8] sm:$0xff]  ;;  %s629_s16 = scalar_lea.sflag [#allocation4], %s1511_s8 }
  0x91   : > { %926 = vmatpush3.bf16.msra.mxu0 %v925_v14  ;;  %v450_v49 = vld [vmem:[#allocation7 + $0x78] sm:$0xff]  ;;  %v533_v53 = vld [vmem:[#allocation8 + $0x10] sm:$0xff]  ;;  %v967_v54 = vpack.c.bf16 %v532_v52, %v531_v51  ;;  %v535_v57 = vld [vmem:[#allocation8 + $0x20] sm:$0xff] }
  0x92   : > { %927 = vmatprep.subr.bf16.mxu0 %v1268_v0  ;;  %v964_v50 = vpack.c.bf16 %v450_v49, %v449_v48  ;;  %v534_v55 = vld [vmem:[#allocation8 + $0x18] sm:$0xff]  ;;  %v536_v58 = vld [vmem:[#allocation8 + $0x28] sm:$0xff]  ;;  %v537_v60 = vld [vmem:[#allocation8 + $0x30] sm:$0xff] }
  0x93   : > { %950 = vmatpush3.bf16.msra.mxu1 %v949_v24  ;;  %v970_v56 = vpack.c.bf16 %v534_v55, %v533_v53  ;;  %v973_v59 = vpack.c.bf16 %v536_v58, %v535_v57  ;;  %v538_v61 = vld [vmem:[#allocation8 + $0x38] sm:$0xff]  ;;  %v539_v63 = vld [vmem:[#allocation8 + $0x40] sm:$0xff]  ;;  %v541_v3 = vld [vmem:[#allocation8 + $0x50] sm:$0xff] }
  0x94   : > { %951 = vmatprep.subr.bf16.mxu1 %v1268_v0  ;;  %v976_v62 = vpack.c.bf16 %v538_v61, %v537_v60  ;;  %v542_v4 = vld [vmem:[#allocation8 + $0x58] sm:$0xff]  ;;  %v543_v6 = vld [vmem:[#allocation8 + $0x60] sm:$0xff]  ;;  %v544_v7 = vld [vmem:[#allocation8 + $0x68] sm:$0xff] }
  0x95   : > { %929 = vmatpush3.bf16.msra.mxu0 %v928_v21  ;;  %v982_v5 = vpack.c.bf16 %v542_v4, %v541_v3  ;;  %v985_v8 = vpack.c.bf16 %v544_v7, %v543_v6  ;;  %v755_v9 = vld [vmem:[%s1623_s2] ss:$0 sm:$0xff]  ;;  %v546_v16 = vld [vmem:[#allocation8 + $0x78] sm:$0xff] }
  0x96   : > { %930 = vmatprep.subr.bf16.mxu0 %v1268_v0  ;;  %v545_v15 = vld [vmem:[#allocation8 + $0x70] sm:$0xff] }
  0x97   : > { %953 = vmatpush3.bf16.msra.mxu1 %v952_v30  ;;  %v988_v17 = vpack.c.bf16 %v546_v16, %v545_v15  ;;  %v757_v23 = vld [vmem:[%s1627_s6] ss:$0 sm:$0xff] }
  0x98   : > { %954 = vmatprep.subr.bf16.mxu1 %v1268_v0 }
  0x99   : > { %932 = vmatpush3.bf16.msra.mxu0 %v931_v27 }
  0x9a   : > { %933 = vmatprep.subr.bf16.mxu0 %v1268_v0 }
  0x9b   : > { %956 = vmatpush3.bf16.msra.mxu1 %v955_v36 }
  0x9c   : > { %957 = vmatprep.subr.bf16.mxu1 %v1268_v0 }
  0x9d   : > { %935 = vmatpush3.bf16.msra.mxu0 %v934_v33 }
  0x9e   : > { %936 = vmatprep.subr.bf16.mxu0 %v1268_v0 }
  0x9f   : > { %959 = vmatpush3.bf16.msra.mxu1 %v958_v42 }
  0xa0   : > { %960 = vmatprep.subr.bf16.mxu1 %v1268_v0 }
  0xa1   : > { %938 = vmatpush3.bf16.msra.mxu0 %v937_v39 }
  0xa2   : > { %939 = vmatprep.subr.bf16.mxu0 %v1268_v0 }
  0xa3   : > { %962 = vmatpush3.bf16.msra.mxu1 %v961_v46 }
  0xa4   : > { %963 = vmatprep.subr.bf16.mxu1 %v1268_v0 }
  0xa5   : > { %941 = vmatpush3.bf16.msra.mxu0 %v940_v45 }
  0xa6   : > { %966 = vmatprep.subr.bf16.mxu0 %v1268_v0 }
  0xa7   : > { %965 = vmatpush3.bf16.msra.mxu1 %v964_v50 }
  0xa8   : > { %846 = vmatmul.mubr.f32.vlgmr.msra.gmra.mrb[0].mxu0 %v338_v47 }
  0xa9   : > { %915 = vmatprep.mubr.msk.f32.mxu0 %vm1269_vm0, %v1270_v1  ;;  %968 = vmatpush3.bf16.msra.mxu0 %v967_v54  ;;  %v540_v1 = vld [vmem:[#allocation8 + $0x48] sm:$0xff] }
  0xaa   : > { %969 = vmatprep.subr.bf16.mxu0 %v1268_v0  ;;  %v979_v2 = vpack.c.bf16 %v540_v1, %v539_v63 }
  0xad   : > { %971 = vmatpush3.bf16.msra.mxu0 %v970_v56 }
  0xae   : > { %972 = vmatprep.subr.bf16.mxu0 %v1268_v0 }
  0xb1   : > { %974 = vmatpush3.bf16.msra.mxu0 %v973_v59 }
  0xb2   : > { %975 = vmatprep.subr.bf16.mxu0 %v1268_v0 }
  0xb5   : > { %977 = vmatpush3.bf16.msra.mxu0 %v976_v62 }
  0xb6   : > { %978 = vmatprep.subr.bf16.mxu0 %v1268_v0 }
  0xb9   : > { %980 = vmatpush3.bf16.msra.mxu0 %v979_v2 }
  0xba   : > { %981 = vmatprep.subr.bf16.mxu0 %v1268_v0 }
  0xbd   : > { %983 = vmatpush3.bf16.msra.mxu0 %v982_v5 }
  0xbe   : > { %984 = vmatprep.subr.bf16.mxu0 %v1268_v0 }
  0xc1   : > { %986 = vmatpush3.bf16.msra.mxu0 %v985_v8 }
  0xc2   : > { %987 = vmatprep.subr.bf16.mxu0 %v1268_v0  ;;  %v756_v0 = vld [vmem:[%s1625_s4] ss:$0 sm:$0xff] }
  0xc5   : > { %989 = vmatpush3.bf16.msra.mxu0 %v988_v17 }
 0x17b   : > { %v428_v10 = vpop.f32.mrb[0].mxu0 }
 0x17c   : > { %v429_v11 = vadd.f32 %v755_v9, %v428_v10  ;;  %v847_v12 = vpop.f32.mrb[1].mxu0 }
 0x17e   : > { %v433_v13 = vmul.f32 0.2, %v429_v11  ;;  %vm432_vm1 = vcmp.ge.f32.partialorder %v429_v11, 0.0 }
 0x180   : > { %v434_v14 = vsel %vm432_vm1, %v429_v11, %v433_v13 }
 0x181   : > { %881 = vmatmul.mubr.f32.vlgmr.msra.gmra.mrb[0].mxu1 %v434_v14 }
 0x254   : > { %v524_v18 = vpop.f32.mrb[0].mxu1 }
 0x255   : > { %v525_v19 = vadd.f32 %v756_v0, %v524_v18  ;;  %v882_v20 = vpop.f32.mrb[1].mxu1 }
 0x257   : > { %vm528_vm2 = vcmp.ge.f32.partialorder %v525_v19, 0.0  ;;  %v529_v21 = vmul.f32 0.2, %v525_v19 }
 0x259   : > { %v530_v22 = vsel %vm528_vm2, %v525_v19, %v529_v21 }
 0x25a   : > { %916 = vmatmul.mubr.f32.vlgmr.msra.gmra.mrb[2].mxu0 %v530_v22 }
 0x32d   : > { %v620_v24 = vpop.f32.mrb[2].mxu0 }
 0x32e   : > { %v621_v25 = vadd.f32 %v757_v23, %v620_v24  ;;  %v917_v26 = vpop.f32.mrb[3].mxu0 }
 0x330   : > { %vm624_vm3 = vcmp.ge.f32.partialorder %v621_v25, 0.0  ;;  %v625_v27 = vmul.f32 0.2, %v621_v25 }
 0x332   : > { %v626_v28 = vsel %vm624_vm3, %v621_v25, %v625_v27 }
 0x333   : > { %627 = vst [vmem:[%s337_s20] sm:$0xff] %v626_v28 }
 0x334   : > { %1199 = shalt.err (!%p1196_p4)
}
 0x335   : > { %s1200_s8 = scalar_lea.hbm %s1577_s21, 128  ;;  %s1204_s11 = scalar_lea.hbm %s1628_s7, 256 }
 0x336   : > { %p1201_p0 = scmp.ne.s32.totalorder %s1577_s21, %s1200_s8  ;;  %p1205_p8 = scmp.lt.u32.totalorder %s1577_s21, %s1628_s7 }
 0x337   : > { %p1206_p13 = scmp.lt.u32.totalorder %s1204_s11, %s1200_s8  ;;  %p1208_p10 = scmp.lt.u32.totalorder %s1200_s8, %s1577_s21 }
 0x338   : > { %p1202_p9 = pnand %p1201_p0, %p1466_p5 }
 0x339   : > { %p1207_p6 = por %p1206_p13, %p1205_p8 }
 0x33a   : > { %p1203_p11 = pneg %p1202_p9 }
 0x33b   : > { %p1209_p3 = por %p1208_p10, %p1207_p6 }
 0x33d   : > { %p1210_p7 = pnand %p1209_p3, %p1203_p11 }
 0x33f   : > { %1213 = shalt.err (!%p1210_p7)
}
 0x340   : > { %1004 = dma.vmem_to_hbm [thread:$0]  (%p1466_p5), %s1579_s15, 128, %s1577_s21, %s629_s16  }
 0x341 PF: > { %s1648_s20 = sld [smem:[#allocation15_spill]]  ;;  %s654_s29 = sand.u32 1, %s1248_s24  }
 0x342   : > { %p1650_p1 = scmp.ge.s32.totalorder %s1260_s27, 2  ;;  %s655_s12 = scalar_lea.sflag [#allocation4], %s654_s29 }
 0x347   : > { %p1649_p12 = scmp.ne.s32.totalorder %s1648_s20, 0 }
 0x349   : > { %p1021_p2 = pnand %p1650_p1, %p1649_p12 }
 0x34b   : > { %1243 = dma.done.wait (!%p1021_p2), %s655_s12, 128  }
 0x34c   : > { %1245 = vsyncadd (!%p1021_p2), %s655_s12, 4294967168  ;;  %p22_p4 = scmp.ge.s32.totalorder %s1452_s22, 4   ;;  %s1651_s24 = smov %s1252_s25 }
 0x34d   : > { %s1652_s25 = smov %s1256_s26  ;;  %s1653_s26 = smov %s1462_s18 }
 0x34e   : > { %s1654_s27 = smov %s1452_s22  ;;  %24 = sbr.rel (!%p22_p4) target bundleno = 7 (0x7), region = 105 }
 0x355   :  { %660 = vsyncpa [#allocation3], 1 }
 0x356   :  { %662 = vsyncpa [#allocation3 + $0x1], 1 }
 0x357   :  { %663 = vsyncpa [#allocation6], 1 }
 0x358   :  { %664 = vsyncpa [#allocation9], 1 }
 0x359   :  { %665 = vsyncpa [#allocation4], 1 }
 0x35a   :  { %667 = vsyncpa [#allocation4 + $0x1], 1 }

</bundles_post_ra>
